<compile_context>
chip_gen: v5e
topology: v5e:2x2
jax: 0.10.0
libtpu: 0.0.40
codegen_flags: <defaults>
</compile_context>

<pallas_src>
import functools

import jax
import jax.numpy as jnp
from jax.experimental import pallas as pl
from jax.experimental.pallas import tpu as pltpu


_TEMPS_F32 = 4                       # live full-tile f32 temporaries in-kernel
_TARGET_STEP_BYTES = 4 * 1024 * 1024 # streamed HBM bytes/grid-step floor
_TARGET_BLOCKS = 4                   # >= 2 blocks per TensorCore on v7x


def _round_up(x, m):
    return ((x + m - 1) // m) * m


def _ceil_div(a, b):
    return -(-a // b)


def _vmem_limit_bytes():
    """Generation-aware scoped-VMEM limit (conservative fallback)."""
    try:
        cap = int(pltpu.get_tpu_info().vmem_capacity_bytes)
    except Exception:
        cap = 64 * 1024 * 1024
    # 128 MiB parts (v5e/v6e): 64 MiB scoped limit. 64 MiB parts (v7x) or
    # unknown: stay at 32 MiB so the tile never overshoots physical VMEM.
    if cap >= 128 * 1024 * 1024:
        return 64 * 1024 * 1024
    return 32 * 1024 * 1024


def _pick_tile_rows(n_rows, n_cols, isx, ist, vmem_limit):
    """Largest multiple-of-8 row tile whose *real* VMEM working set fits,
    with an HBM bytes-per-step floor and a >= _TARGET_BLOCKS split clamp."""
    padded_cols = _round_up(n_cols, 128)  # VMEM tiles are lane-padded to 128
    # 2 inputs x 2 pipeline buffers in stream dtype + f32 full-tile temps.
    bytes_per_row = 2 * padded_cols * (isx + ist) + _TEMPS_F32 * padded_cols * 4
    budget = (vmem_limit * 3) // 4        # leave 25% headroom for the rest
    tn_budget = (budget // bytes_per_row // 8) * 8
    if tn_budget < 8:
        # TODO(synk): vocab-scale C needs a second "arbitrary" grid axis over C
        # with an online logsumexp; not implemented here.
        raise ValueError(
            f"SoftLabels kernel: n_cols={n_cols} too wide for an 8-row block "
            f"within the {vmem_limit // (1024*1024)} MiB VMEM budget.")
    rows_cap = _round_up(n_rows, 8)       # never bigger than the problem
    # Enough rows that each grid step streams >= ~4 MiB from HBM (amortizes
    # the ~0.35 us per-step overhead), capped at the problem size.
    rows_floor = min(
        _round_up(_ceil_div(_TARGET_STEP_BYTES, n_cols * (isx + ist)), 8),
        rows_cap)
    # Prefer >= _TARGET_BLOCKS blocks (megacore sharding on v7x) unless that
    # would drop a block below the bytes floor.
    split_cap = _round_up(_ceil_div(n_rows, _TARGET_BLOCKS), 8)
    tn = min(tn_budget, rows_cap, max(split_cap, rows_floor))
    return max(tn, 8)


def _soft_labels_kernel(x_ref, t_ref, o_ref, *, n_rows, tile_rows, mask_tail):
    x = x_ref[...].astype(jnp.float32)    # (tile_rows, n_cols)
    t = t_ref[...].astype(jnp.float32)

    # Numerically stable log_softmax over classes (axis=1), with the per-row
    # class reduction fused:
    #   sum_c (x - m - lse) * t  ==  sum_c(shifted * t) - lse * sum_c(t)
    m = jnp.max(x, axis=1, keepdims=True)                            # (tile, 1)
    shifted = x - m
    lse = jnp.log(jnp.sum(jnp.exp(shifted), axis=1, keepdims=True))  # (tile, 1)
    row_dot = jnp.sum(shifted * t, axis=1, keepdims=True)            # (tile, 1)
    row_tsum = jnp.sum(t, axis=1, keepdims=True)                     # (tile, 1)
    contrib = row_dot - lse * row_tsum                               # (tile, 1)

    if mask_tail:
        # Only the cheap (tile_rows, 1) per-row vector is masked, with a
        # select so garbage/Inf/NaN from padded tail rows cannot propagate.
        row0 = pl.program_id(0) * tile_rows
        rid = jax.lax.broadcasted_iota(jnp.int32, (tile_rows, 1), 0) + row0
        contrib = jnp.where(rid < n_rows, contrib, 0.0)

    partial = jnp.sum(contrib)                                       # f32 scalar
    # Splat the block partial over this block's own lane-aligned (1, 8, 128)
    # output tile; the tiny cross-block reduction happens outside the kernel.
    o_ref[...] = jnp.broadcast_to(partial, o_ref.shape)


def soft_labels_loss(inp, target, *, tile_rows=None):
    """inp, target: (N, C) arrays (any float dtype). Returns scalar f32 loss."""
    assert inp.shape == target.shape and inp.ndim == 2
    n_rows, n_cols = inp.shape
    isx = jnp.dtype(inp.dtype).itemsize
    ist = jnp.dtype(target.dtype).itemsize
    vmem_limit = _vmem_limit_bytes()
    if tile_rows is None:
        tile_rows = _pick_tile_rows(n_rows, n_cols, isx, ist, vmem_limit)
    num_blocks = pl.cdiv(n_rows, tile_rows)
    mask_tail = (n_rows % tile_rows) != 0

    kernel = functools.partial(
        _soft_labels_kernel,
        n_rows=n_rows, tile_rows=tile_rows, mask_tail=mask_tail)

    cost = pl.CostEstimate(
        flops=5 * n_rows * n_cols,
        transcendentals=n_rows * n_cols,
        bytes_accessed=n_rows * n_cols * (isx + ist) + num_blocks * 8 * 128 * 4,
    )

    partials = pl.pallas_call(
        kernel,
        out_shape=jax.ShapeDtypeStruct((num_blocks, 8, 128), jnp.float32),
        grid_spec=pltpu.PrefetchScalarGridSpec(
            num_scalar_prefetch=0,
            grid=(num_blocks,),
            in_specs=[
                pl.BlockSpec((tile_rows, n_cols), lambda i: (i, 0)),
                pl.BlockSpec((tile_rows, n_cols), lambda i: (i, 0)),
            ],
            out_specs=pl.BlockSpec((1, 8, 128), lambda i: (i, 0, 0)),
        ),
        compiler_params=pltpu.CompilerParams(
            dimension_semantics=("parallel",),
            vmem_limit_bytes=vmem_limit,
        ),
        cost_estimate=cost,
    )(inp, target)

    # -mean over all N*C elements; 1/(N*C) is a trace-time constant.
    neg_inv_count = -1.0 / float(n_rows * n_cols)
    return jnp.sum(partials[:, 0, 0]) * jnp.float32(neg_inv_count)


def soft_labels_ref(inp, target):
    """Pure-JAX reference mirroring the PyTorch module."""
    log_sm = jax.nn.log_softmax(inp.astype(jnp.float32), axis=1)
    return -jnp.mean(log_sm * target.astype(jnp.float32))


if __name__ == "__main__":
    key = jax.random.PRNGKey(0)
    k1, k2, k3, k4 = jax.random.split(key, 4)

    # Case 1: single-block shape (batch=8, classes=16).
    N, C = 8, 16
    logits = jax.random.normal(k1, (N, C), dtype=jnp.float32)
    raw = jax.random.uniform(k2, (N, C), dtype=jnp.float32)
    target = raw / jnp.sum(raw, axis=1, keepdims=True)

    loss = soft_labels_loss(logits, target)
    jax.block_until_ready(loss)
    ref = soft_labels_ref(logits, target)
    assert jnp.allclose(loss, ref, rtol=1e-5, atol=1e-6), (loss, ref)

    # Case 2: multi-block grid with a padded tail block (exercises the grid,
    # the pipeline, and the per-row tail mask) via a small tile_rows override.
    N2, C2 = 40, 16
    logits2 = jax.random.normal(k3, (N2, C2), dtype=jnp.float32)
    raw2 = jax.random.uniform(k4, (N2, C2), dtype=jnp.float32)
    target2 = raw2 / jnp.sum(raw2, axis=1, keepdims=True)

    loss2 = soft_labels_loss(logits2, target2, tile_rows=16)
    jax.block_until_ready(loss2)
    ref2 = soft_labels_ref(logits2, target2)
    assert jnp.allclose(loss2, ref2, rtol=1e-5, atol=1e-6), (loss2, ref2)

    print("KERNEL_OK")
</pallas_src>

<mosaic_0001>
module attributes {stable_mosaic.version = 11 : i64} {
  func.func @_soft_labels_kernel(%arg0: i32, %arg1: memref<8x16xf32, #tpu.memory_space<vmem>>, %arg2: memref<8x16xf32, #tpu.memory_space<vmem>>, %arg3: memref<1x8x128xf32, #tpu.memory_space<vmem>>) attributes {dimension_semantics = [#tpu.dimension_semantics<parallel>], iteration_bounds = array<i64: 1>, scalar_prefetch = 0 : i64, scratch_operands = 0 : i64, tpu.core_type = #tpu.core_type<tc>, window_params = [{transform_indices = @transform_0, window_bounds = array<i64: 8, 16>}, {transform_indices = @transform_1, window_bounds = array<i64: 8, 16>}, {transform_indices = @transform_2, window_bounds = array<i64: 1, 8, 128>}]} {
    %c0 = arith.constant 0 : index
    %c0_0 = arith.constant 0 : index
    %0 = vector.load %arg1[%c0, %c0_0] : memref<8x16xf32, #tpu.memory_space<vmem>>, vector<8x16xf32>
    %c0_1 = arith.constant 0 : index
    %c0_2 = arith.constant 0 : index
    %1 = vector.load %arg2[%c0_1, %c0_2] : memref<8x16xf32, #tpu.memory_space<vmem>>, vector<8x16xf32>
    %cst = arith.constant dense<0xFF800000> : vector<8xf32>
    %2 = vector.multi_reduction <maximumf>, %0, %cst [1] : vector<8x16xf32> to vector<8xf32>
    %3 = vector.shape_cast %2 : vector<8xf32> to vector<8x1xf32>
    %4 = vector.broadcast %3 : vector<8x1xf32> to vector<8x16xf32>
    %5 = arith.subf %0, %4 : vector<8x16xf32>
    %6 = math.exp %5 : vector<8x16xf32>
    %cst_3 = arith.constant dense<0.000000e+00> : vector<8xf32>
    %7 = vector.multi_reduction <add>, %6, %cst_3 [1] : vector<8x16xf32> to vector<8xf32>
    %8 = vector.shape_cast %7 : vector<8xf32> to vector<8x1xf32>
    %9 = math.log %8 : vector<8x1xf32>
    %10 = arith.mulf %5, %1 : vector<8x16xf32>
    %cst_4 = arith.constant dense<0.000000e+00> : vector<8xf32>
    %11 = vector.multi_reduction <add>, %10, %cst_4 [1] : vector<8x16xf32> to vector<8xf32>
    %12 = vector.shape_cast %11 : vector<8xf32> to vector<8x1xf32>
    %cst_5 = arith.constant dense<0.000000e+00> : vector<8xf32>
    %13 = vector.multi_reduction <add>, %1, %cst_5 [1] : vector<8x16xf32> to vector<8xf32>
    %14 = vector.shape_cast %13 : vector<8xf32> to vector<8x1xf32>
    %15 = arith.mulf %9, %14 : vector<8x1xf32>
    %16 = arith.subf %12, %15 : vector<8x1xf32>
    %17 = vector.shape_cast %16 : vector<8x1xf32> to vector<1x8x1xf32>
    %cst_6 = arith.constant dense<0.000000e+00> : vector<1xf32>
    %18 = vector.multi_reduction <add>, %17, %cst_6 [1, 2] : vector<1x8x1xf32> to vector<1xf32>
    %19 = vector.shape_cast %18 : vector<1xf32> to vector<1x1x1xf32>
    %20 = vector.extract %19[0, 0, 0] : f32 from vector<1x1x1xf32>
    %21 = vector.broadcast %20 : f32 to vector<1x8x128xf32>
    %c0_7 = arith.constant 0 : index
    %c0_8 = arith.constant 0 : index
    %c0_9 = arith.constant 0 : index
    %22 = vector.load %arg3[%c0_7, %c0_8, %c0_9] : memref<1x8x128xf32, #tpu.memory_space<vmem>>, vector<1x8x128xf32>
    tpu.vector_store %arg3[%c0_7, %c0_8, %c0_9], %21 {strides = array<i32>} : memref<1x8x128xf32, #tpu.memory_space<vmem>>, vector<1x8x128xf32>,
    return
  }
  func.func @transform_0(%arg0: i32) -> (i32, i32) {
    %c0_i32 = arith.constant 0 : i32
    %c0_i32_0 = arith.constant 0 : i32
    return %arg0, %c0_i32 : i32, i32
  }
  func.func @transform_1(%arg0: i32) -> (i32, i32) {
    %c0_i32 = arith.constant 0 : i32
    %c0_i32_0 = arith.constant 0 : i32
    return %arg0, %c0_i32 : i32, i32
  }
  func.func @transform_2(%arg0: i32) -> (i32, i32, i32) {
    %c0_i32 = arith.constant 0 : i32
    %c0_i32_0 = arith.constant 0 : i32
    %c0_i32_1 = arith.constant 0 : i32
    return %arg0, %c0_i32, %c0_i32_0 : i32, i32, i32
  }
}

</mosaic_0001>

<bundles_post_ra>
// kernel: tpu_custom_call.1
= control target key start
LH: loop header
LB: loop body
LE: loop exit
PB: predicated region body
PF: predicated region fallthrough
CT: control target
= control target key end

     0   :  { %7 = vsyncpa [#allocation3], 0  ;;  %s208_s0 = inlined_call_operand.hbm [shape: f32[8,16], index: 0, kind: input, shape index: {}]   ;;  %s209_s1 = inlined_call_operand.hbm [shape: f32[8,16], index: 1, kind: input, shape index: {}]   ;;  %s210_s2 = inlined_call_operand.hbm [shape: f32[1,8,128], index: 2, kind: output, shape index: {}]  }
   0x1   :  { %8 = vsyncpa [#allocation6], 0 }
   0x2   :  { %9 = vsyncpa [#allocation4], 0  ;;  %s15_s11 = sshll.u32 %s208_s0, 4  ;;  %s181_s12 = smov [#allocation2]   ;;  %s16_s11 = int_to_ptr.hbm [resolvable:$true] %s15_s11 }
   0x3   :  { %s17_s13 = sshll.u32 %s181_s12, 4  ;;  %s26_s16 = sshll.u32 %s209_s1, 4  ;;  %s18_s13 = int_to_ptr.vmem [resolvable:$true] %s17_s13  ;;  %s27_s16 = int_to_ptr.hbm [resolvable:$true] %s26_s16 }
   0x4   :  { %20 = dma.hbm_to_vmem [thread:$0]  %s16_s11, 128, %s18_s13, [#allocation3]  }
   0x5   :  { %s182_s17 = smov [#allocation5]  }
   0x6   :  { %s28_s18 = sshll.u32 %s182_s17, 4  ;;  %s29_s18 = int_to_ptr.vmem [resolvable:$true] %s28_s18 }
   0x7   :  { %31 = dma.hbm_to_vmem [thread:$0]  %s27_s16, 128, %s29_s18, [#allocation6]  }
   0x8   :  { %175 = dma.done.wait [#allocation3], 128  }
   0x9   :  { %176 = vsyncadd [#allocation3], 4294967168 }
   0xa   :  { %177 = dma.done.wait [#allocation6], 128  }
   0xb   :  { %178 = vsyncadd [#allocation6], 4294967168  ;;  %vm42_vm0 = vcmask 130048   ;;  %v40_v0 = vld [vmem:[#allocation2] sm:$0xff]  ;;  %v41_v1 = vld [vmem:[#allocation5] sm:$0xff]  ;;  %vm63_vm1 = vcmask 7168  }
   0xc   :  { %v43_v2 = vsel %vm42_vm0, %v40_v0, -inf  ;;  %v58_v3 = vsel %vm42_vm0, %v41_v1, 0.0  ;;  %s183_s0 = smov [#allocation7]   ;;  %s83_s21 = sshll.u32 %s210_s2, 4  ;;  %s84_s21 = int_to_ptr.hbm [resolvable:$true] %s83_s21 }
   0xd   :  { %44 = vmax.xlane.f32.xlu0 %v43_v2  ;;  %59 = vadd.xlane.f32.xlu1 %v58_v3  ;;  %s81_s1 = sshll.u32 %s183_s0, 4  ;;  %s82_s1 = int_to_ptr.vmem [resolvable:$true] %s81_s1 }
  0x80   :  { %v45_v4 = vpop.xlane.xlu0 %44  ;;  %v60_v12 = vpop.xlane.xlu1 %59 }
  0x81   :  { %v46_v5 = vsub.f32 %v40_v0, %v45_v4 }
  0x83   :  { %v47_v6 = vmul.f32 1.442695, %v46_v5  ;;  %v54_v7 = vmul.f32 %v46_v5, %v41_v1 }
  0x85   :  { %99 = vpow2.f32 %v47_v6  ;;  %v55_v8 = vsel %vm42_vm0, %v54_v7, 0.0 }
  0x86   :  { %56 = vadd.xlane.f32.xlu1 %v55_v8 }
  0x8b   :  { %v100_v9 = vpop.eup %99 }
  0x8c   :  { %v49_v10 = vsel %vm42_vm0, %v100_v9, 0.0 }
  0x8d   :  { %50 = vadd.xlane.f32.xlu0 %v49_v10 }
  0xf9   :  { %v57_v16 = vpop.xlane.xlu1 %56 }
 0x100   :  { %v51_v11 = vpop.xlane.xlu0 %50 }
 0x101   :  { %101 = vlog2.f32 %v51_v11 }
 0x107   :  { %v102_v13 = vpop.eup %101 }
 0x108   :  { %v53_v14 = vmul.f32 0.6931472, %v102_v13 }
 0x10a   :  { %v61_v15 = vmul.f32 %v60_v12, %v53_v14 }
 0x10c   :  { %v62_v17 = vsub.f32 %v57_v16, %v61_v15 }
 0x10e   :  { %v64_v18 = vsel %vm63_vm1, %v62_v17, 0.0 }
 0x10f   :  { %65 = vadd.xlane.f32.xlu2 %v64_v18 }
 0x182   :  { %v66_v19 = vpop.xlane.xlu2 %65 }
 0x183   :  { %v67_v20 = vrot.slane %v66_v19, 4 }
 0x185   :  { %v68_v21 = vadd.f32 %v67_v20, %v66_v19 }
 0x187   :  { %v69_v22 = vrot.slane %v68_v21, 2 }
 0x189   :  { %v70_v23 = vadd.f32 %v69_v22, %v68_v21 }
 0x18b   :  { %v71_v24 = vrot.slane %v70_v23, 1 }
 0x18d   :  { %v72_v25 = vadd.f32 %v71_v24, %v70_v23 }
 0x18f   :  { %94 = vpush %v72_v25 }
 0x1c0   :  { %s95_s22 = spop %94 }
 0x1c1   :  { %v74_v26 = vstv %s95_s22 }
 0x1c2   :  { %75 = vst [vmem:[#allocation7] sm:$0xff] %v74_v26 }
 0x1c3   :  { %86 = dma.vmem_to_hbm [thread:$0]  %s82_s1, 128, %s84_s21, [#allocation4]  }
 0x1c4   :  { %179 = dma.done.wait [#allocation4], 128  }
 0x1c5   :  { %180 = vsyncadd [#allocation4], 4294967168 }
 0x1c6   :  { %91 = vsyncpa [#allocation3], 1 }
 0x1c7   :  { %92 = vsyncpa [#allocation6], 1 }
 0x1c8   :  { %93 = vsyncpa [#allocation4], 1 }

</bundles_post_ra>
